<compile_context>
chip_gen: v7x
topology: tpu7x:2x2x1
jax: 0.10.0
libtpu: 0.0.40
codegen_flags: <defaults>
</compile_context>

<pallas_src>
import functools
import math

import jax
import jax.numpy as jnp
from jax import lax
from jax.experimental import pallas as pl
from jax.experimental.pallas import tpu as pltpu


def _round_up(x, m):
    return (x + m - 1) // m * m


def _temporal_attention_kernel(z_ref, m_ref, o_ref, *, T, D):
    # z_ref: (B, T*D) lane-dense tile of z (native dtype).
    # m_ref: (D, D) f32 tile, M = W^T @ W (grid-invariant).
    # o_ref: (B, D) output tile (caller dtype).
    m = m_ref[...]                                                   # (D, D) f32

    def z_slice(t):
        # (B, D) time-slice of the lane-dense z tile, upcast to f32 for math.
        return z_ref[:, t * D:(t + 1) * D].astype(jnp.float32)

    z_last = z_slice(T - 1)                                          # (B, D)
    # v[b, d] = sum_e M[d, e] * z_last[b, e]   (MXU; contracts M's dim 1, no
    # physical transpose of the weight — M is symmetric anyway).
    v = lax.dot_general(
        z_last, m,
        dimension_numbers=(((1,), (1,)), ((), ())),
        preferred_element_type=jnp.float32)                          # (B, D)

    # Pass 1 over time: logits lam_t[b] = <z[b, t, :], v[b, :]>, kept as T
    # separate (B, 1) columns — no (B, T, D) or (B, T) temporaries.
    lam = [jnp.sum(z_slice(t) * v, axis=-1, keepdims=True) for t in range(T)]

    # Numerically stable softmax over time.
    lam_max = functools.reduce(jnp.maximum, lam)                     # (B, 1)
    e = [jnp.exp(l - lam_max) for l in lam]                          # T x (B, 1)
    denom = functools.reduce(jnp.add, e)                             # (B, 1)
    # Exact reciprocal keeps the f32 self-test tight; the kernel is HBM-bound,
    # so the EUP approx buys nothing here.
    inv = pl.reciprocal(denom, approx=False)                         # (B, 1)

    # Pass 2 over time: out[b, :] = sum_t softmax_t[b] * z[b, t, :].
    out = jnp.zeros_like(v)                                          # (B, D) f32
    for t in range(T):
        out = out + (e[t] * inv) * z_slice(t)

    o_ref[...] = out.astype(o_ref.dtype)


def temporal_attention(z, w):
    """z: [N, T, D], w: [D, D] PyTorch nn.Linear weight (h = z @ w.T) -> [N, D]."""
    N, T, D = z.shape
    assert w.shape == (D, D)
    out_dtype = z.dtype
    z_item = jnp.dtype(z.dtype).itemsize
    out_item = jnp.dtype(out_dtype).itemsize

    # Sublane alignment depends on the streamed dtype (f32: 8, bf16: 16, i8: 32).
    row_align = 8 if z_item >= 4 else (16 if z_item == 2 else 32)

    # M = W^T @ W, computed once outside the kernel (tiny D x D, plain XLA).
    m = jnp.dot(w.T.astype(jnp.float32), w.astype(jnp.float32),
                preferred_element_type=jnp.float32)

    # Lane-dense, native-dtype 2-D view of z (contiguous reshape -> no HBM copy,
    # no astype copy).
    z2 = z.reshape(N, T * D)

    # Pad only for sublane alignment (at most row_align-1 rows).  A ragged last
    # *block* (N_al % B != 0) is handled by Pallas OOB masking, not by padding.
    N_al = _round_up(N, row_align)
    if N_al != N:
        z2 = jnp.pad(z2, ((0, N_al - N), (0, 0)))

    # ---- generation-aware VMEM budget --------------------------------------
    try:
        vmem_cap = int(pltpu.get_tpu_info().vmem_capacity_bytes)
    except Exception:
        vmem_cap = 0
    if vmem_cap < (32 << 20):          # unknown / implausible -> assume v7x 64 MiB
        vmem_cap = 64 * 1024 * 1024
    vmem_target = (vmem_cap * 3) // 4  # headroom for compiler-internal scratch

    # Honest per-row accounting: double-buffered z tile + double-buffered out
    # tile + f32 working set of the unrolled time loop (a few (row, D) values
    # and 2*T per-row scalars).
    per_row = 2 * T * D * z_item + 2 * D * out_item + 6 * D * 4 + 2 * T * 4
    fixed = 2 * D * D * 4 + (1 << 20)          # double-buffered M + fixed slack
    b_budget = max(row_align,
                   (max(vmem_target - fixed, 0) // per_row)
                   // row_align * row_align)

    # ---- batch tile / grid --------------------------------------------------
    B = min(b_budget, N_al)
    if N_al > 1024:
        # Plenty of rows: aim for >= ~8 grid steps, but never shrink the tile
        # below 512 rows (measured HBM-roofline knee for streaming kernels).
        B = min(B, max(512, _round_up(pl.cdiv(N_al, 8), row_align)))
    elif N_al > 512:
        # At least 2 grid steps so both v7x TensorCores get work.
        B = min(B, _round_up(pl.cdiv(N_al, 2), row_align))
    B = max(row_align, (B // row_align) * row_align)
    grid = (pl.cdiv(N_al, B),)

    need = fixed + per_row * B + (1 << 20)
    vmem_limit = int(min(max(need, 32 * 1024 * 1024), (vmem_cap * 9) // 10))

    kernel = functools.partial(_temporal_attention_kernel, T=T, D=D)
    out = pl.pallas_call(
        kernel,
        out_shape=jax.ShapeDtypeStruct((N_al, D), out_dtype),
        grid_spec=pltpu.PrefetchScalarGridSpec(
            num_scalar_prefetch=0,
            grid=grid,
            in_specs=[
                pl.BlockSpec((B, T * D), lambda b: (b, 0)),
                pl.BlockSpec((D, D), lambda b: (0, 0)),
            ],
            out_specs=pl.BlockSpec((B, D), lambda b: (b, 0)),
        ),
        compiler_params=pltpu.CompilerParams(
            dimension_semantics=("parallel",),
            vmem_limit_bytes=vmem_limit,
        ),
    )(z2, m)

    return out[:N]


def _reference(z, w):
    # Pure-JAX reference mirroring the PyTorch forward exactly.
    h = jnp.einsum("ntd,ed->nte", z, w)                # Linear(bias=False)
    q = h[:, -1, :]                                    # [N, D]
    lam = jnp.einsum("ntd,nd->nt", h, q)               # [N, T]
    lam = jax.nn.softmax(lam, axis=1)                  # softmax over time
    return jnp.einsum("nt,ntd->nd", lam, z)            # [N, D]


if __name__ == "__main__":
    # Small shapes consistent with the module: batch=2, seq=8, d_model=32.
    N, T, D = 2, 8, 32
    key = jax.random.PRNGKey(0)
    kz, kw = jax.random.split(key)

    z = jax.random.normal(kz, (N, T, D), dtype=jnp.float32)

    # Deterministic Linear weight init (kaiming-uniform-style bound 1/sqrt(D)),
    # PyTorch layout [out_features, in_features] = [D, D].
    bound = 1.0 / math.sqrt(D)
    w = jax.random.uniform(kw, (D, D), minval=-bound, maxval=bound,
                           dtype=jnp.float32)

    out = jax.block_until_ready(temporal_attention(z, w))

    ref = _reference(z, w)
    assert out.shape == (N, D)
    assert out.dtype == z.dtype
    err = jnp.max(jnp.abs(out - ref))
    # Tolerance slightly relaxed vs. 1e-5: the M = W^T W rewrite reassociates
    # the f32 reductions (expected ~1e-6 level differences).
    assert jnp.allclose(out, ref, atol=1e-4, rtol=1e-4), f"max abs err {err}"

    print("KERNEL_OK")
</pallas_src>

<mosaic_0001>
module attributes {stable_mosaic.version = 11 : i64} {
  func.func @_temporal_attention_kernel(%arg0: i32, %arg1: memref<8x256xf32, #tpu.memory_space<vmem>>, %arg2: memref<32x32xf32, #tpu.memory_space<vmem>>, %arg3: memref<8x32xf32, #tpu.memory_space<vmem>>) attributes {dimension_semantics = [#tpu.dimension_semantics<parallel>], iteration_bounds = array<i64: 1>, scalar_prefetch = 0 : i64, scratch_operands = 0 : i64, tpu.core_type = #tpu.core_type<tc>, window_params = [{transform_indices = @transform_0, window_bounds = array<i64: 8, 256>}, {pipeline_mode = #tpu.pipeline_mode<synchronous>, transform_indices = @transform_1, window_bounds = array<i64: 32, 32>}, {transform_indices = @transform_2, window_bounds = array<i64: 8, 32>}]} {
    %c0 = arith.constant 0 : index
    %c0_0 = arith.constant 0 : index
    %0 = vector.load %arg2[%c0, %c0_0] : memref<32x32xf32, #tpu.memory_space<vmem>>, vector<32x32xf32>
    %c0_1 = arith.constant 0 : index
    %c224 = arith.constant 224 : index
    %1 = vector.load %arg1[%c0_1, %c224] : memref<8x256xf32, #tpu.memory_space<vmem>>, vector<8x32xf32>
    %cst = arith.constant dense<0.000000e+00> : vector<8x32xf32>
    %2 = tpu.matmul %1, %0, %cst {dimension_numbers = #tpu.dot_dimension_numbers<[1], [1], [0], [0], [0, 0, 1, 0], [], []>} : vector<8x32xf32>, vector<32x32xf32>, vector<8x32xf32> -> vector<8x32xf32>
    %c0_2 = arith.constant 0 : index
    %c0_3 = arith.constant 0 : index
    %3 = vector.load %arg1[%c0_2, %c0_3] : memref<8x256xf32, #tpu.memory_space<vmem>>, vector<8x32xf32>
    %4 = arith.mulf %3, %2 : vector<8x32xf32>
    %cst_4 = arith.constant dense<0.000000e+00> : vector<8xf32>
    %5 = vector.multi_reduction <add>, %4, %cst_4 [1] : vector<8x32xf32> to vector<8xf32>
    %6 = vector.shape_cast %5 : vector<8xf32> to vector<8x1xf32>
    %c0_5 = arith.constant 0 : index
    %c32 = arith.constant 32 : index
    %7 = vector.load %arg1[%c0_5, %c32] : memref<8x256xf32, #tpu.memory_space<vmem>>, vector<8x32xf32>
    %8 = arith.mulf %7, %2 : vector<8x32xf32>
    %cst_6 = arith.constant dense<0.000000e+00> : vector<8xf32>
    %9 = vector.multi_reduction <add>, %8, %cst_6 [1] : vector<8x32xf32> to vector<8xf32>
    %10 = vector.shape_cast %9 : vector<8xf32> to vector<8x1xf32>
    %c0_7 = arith.constant 0 : index
    %c64 = arith.constant 64 : index
    %11 = vector.load %arg1[%c0_7, %c64] : memref<8x256xf32, #tpu.memory_space<vmem>>, vector<8x32xf32>
    %12 = arith.mulf %11, %2 : vector<8x32xf32>
    %cst_8 = arith.constant dense<0.000000e+00> : vector<8xf32>
    %13 = vector.multi_reduction <add>, %12, %cst_8 [1] : vector<8x32xf32> to vector<8xf32>
    %14 = vector.shape_cast %13 : vector<8xf32> to vector<8x1xf32>
    %c0_9 = arith.constant 0 : index
    %c96 = arith.constant 96 : index
    %15 = vector.load %arg1[%c0_9, %c96] : memref<8x256xf32, #tpu.memory_space<vmem>>, vector<8x32xf32>
    %16 = arith.mulf %15, %2 : vector<8x32xf32>
    %cst_10 = arith.constant dense<0.000000e+00> : vector<8xf32>
    %17 = vector.multi_reduction <add>, %16, %cst_10 [1] : vector<8x32xf32> to vector<8xf32>
    %18 = vector.shape_cast %17 : vector<8xf32> to vector<8x1xf32>
    %c0_11 = arith.constant 0 : index
    %c128 = arith.constant 128 : index
    %19 = vector.load %arg1[%c0_11, %c128] : memref<8x256xf32, #tpu.memory_space<vmem>>, vector<8x32xf32>
    %20 = arith.mulf %19, %2 : vector<8x32xf32>
    %cst_12 = arith.constant dense<0.000000e+00> : vector<8xf32>
    %21 = vector.multi_reduction <add>, %20, %cst_12 [1] : vector<8x32xf32> to vector<8xf32>
    %22 = vector.shape_cast %21 : vector<8xf32> to vector<8x1xf32>
    %c0_13 = arith.constant 0 : index
    %c160 = arith.constant 160 : index
    %23 = vector.load %arg1[%c0_13, %c160] : memref<8x256xf32, #tpu.memory_space<vmem>>, vector<8x32xf32>
    %24 = arith.mulf %23, %2 : vector<8x32xf32>
    %cst_14 = arith.constant dense<0.000000e+00> : vector<8xf32>
    %25 = vector.multi_reduction <add>, %24, %cst_14 [1] : vector<8x32xf32> to vector<8xf32>
    %26 = vector.shape_cast %25 : vector<8xf32> to vector<8x1xf32>
    %c0_15 = arith.constant 0 : index
    %c192 = arith.constant 192 : index
    %27 = vector.load %arg1[%c0_15, %c192] : memref<8x256xf32, #tpu.memory_space<vmem>>, vector<8x32xf32>
    %28 = arith.mulf %27, %2 : vector<8x32xf32>
    %cst_16 = arith.constant dense<0.000000e+00> : vector<8xf32>
    %29 = vector.multi_reduction <add>, %28, %cst_16 [1] : vector<8x32xf32> to vector<8xf32>
    %30 = vector.shape_cast %29 : vector<8xf32> to vector<8x1xf32>
    %c0_17 = arith.constant 0 : index
    %c224_18 = arith.constant 224 : index
    %31 = vector.load %arg1[%c0_17, %c224_18] : memref<8x256xf32, #tpu.memory_space<vmem>>, vector<8x32xf32>
    %32 = arith.mulf %31, %2 : vector<8x32xf32>
    %cst_19 = arith.constant dense<0.000000e+00> : vector<8xf32>
    %33 = vector.multi_reduction <add>, %32, %cst_19 [1] : vector<8x32xf32> to vector<8xf32>
    %34 = vector.shape_cast %33 : vector<8xf32> to vector<8x1xf32>
    %35 = arith.maximumf %6, %10 : vector<8x1xf32>
    %36 = arith.maximumf %35, %14 : vector<8x1xf32>
    %37 = arith.maximumf %36, %18 : vector<8x1xf32>
    %38 = arith.maximumf %37, %22 : vector<8x1xf32>
    %39 = arith.maximumf %38, %26 : vector<8x1xf32>
    %40 = arith.maximumf %39, %30 : vector<8x1xf32>
    %41 = arith.maximumf %40, %34 : vector<8x1xf32>
    %42 = arith.subf %6, %41 : vector<8x1xf32>
    %43 = math.exp %42 : vector<8x1xf32>
    %44 = arith.subf %10, %41 : vector<8x1xf32>
    %45 = math.exp %44 : vector<8x1xf32>
    %46 = arith.subf %14, %41 : vector<8x1xf32>
    %47 = math.exp %46 : vector<8x1xf32>
    %48 = arith.subf %18, %41 : vector<8x1xf32>
    %49 = math.exp %48 : vector<8x1xf32>
    %50 = arith.subf %22, %41 : vector<8x1xf32>
    %51 = math.exp %50 : vector<8x1xf32>
    %52 = arith.subf %26, %41 : vector<8x1xf32>
    %53 = math.exp %52 : vector<8x1xf32>
    %54 = arith.subf %30, %41 : vector<8x1xf32>
    %55 = math.exp %54 : vector<8x1xf32>
    %56 = arith.subf %34, %41 : vector<8x1xf32>
    %57 = math.exp %56 : vector<8x1xf32>
    %58 = arith.addf %43, %45 : vector<8x1xf32>
    %59 = arith.addf %58, %47 : vector<8x1xf32>
    %60 = arith.addf %59, %49 : vector<8x1xf32>
    %61 = arith.addf %60, %51 : vector<8x1xf32>
    %62 = arith.addf %61, %53 : vector<8x1xf32>
    %63 = arith.addf %62, %55 : vector<8x1xf32>
    %64 = arith.addf %63, %57 : vector<8x1xf32>
    %65 = tpu.reciprocal %64 : vector<8x1xf32> -> vector<8x1xf32>
    %cst_20 = arith.constant 0.000000e+00 : f32
    %66 = vector.broadcast %cst_20 : f32 to vector<8x32xf32>
    %67 = arith.mulf %43, %65 : vector<8x1xf32>
    %c0_21 = arith.constant 0 : index
    %c0_22 = arith.constant 0 : index
    %68 = vector.load %arg1[%c0_21, %c0_22] : memref<8x256xf32, #tpu.memory_space<vmem>>, vector<8x32xf32>
    %69 = vector.broadcast %67 : vector<8x1xf32> to vector<8x32xf32>
    %70 = arith.mulf %69, %68 : vector<8x32xf32>
    %71 = arith.addf %66, %70 : vector<8x32xf32>
    %72 = arith.mulf %45, %65 : vector<8x1xf32>
    %c0_23 = arith.constant 0 : index
    %c32_24 = arith.constant 32 : index
    %73 = vector.load %arg1[%c0_23, %c32_24] : memref<8x256xf32, #tpu.memory_space<vmem>>, vector<8x32xf32>
    %74 = vector.broadcast %72 : vector<8x1xf32> to vector<8x32xf32>
    %75 = arith.mulf %74, %73 : vector<8x32xf32>
    %76 = arith.addf %71, %75 : vector<8x32xf32>
    %77 = arith.mulf %47, %65 : vector<8x1xf32>
    %c0_25 = arith.constant 0 : index
    %c64_26 = arith.constant 64 : index
    %78 = vector.load %arg1[%c0_25, %c64_26] : memref<8x256xf32, #tpu.memory_space<vmem>>, vector<8x32xf32>
    %79 = vector.broadcast %77 : vector<8x1xf32> to vector<8x32xf32>
    %80 = arith.mulf %79, %78 : vector<8x32xf32>
    %81 = arith.addf %76, %80 : vector<8x32xf32>
    %82 = arith.mulf %49, %65 : vector<8x1xf32>
    %c0_27 = arith.constant 0 : index
    %c96_28 = arith.constant 96 : index
    %83 = vector.load %arg1[%c0_27, %c96_28] : memref<8x256xf32, #tpu.memory_space<vmem>>, vector<8x32xf32>
    %84 = vector.broadcast %82 : vector<8x1xf32> to vector<8x32xf32>
    %85 = arith.mulf %84, %83 : vector<8x32xf32>
    %86 = arith.addf %81, %85 : vector<8x32xf32>
    %87 = arith.mulf %51, %65 : vector<8x1xf32>
    %c0_29 = arith.constant 0 : index
    %c128_30 = arith.constant 128 : index
    %88 = vector.load %arg1[%c0_29, %c128_30] : memref<8x256xf32, #tpu.memory_space<vmem>>, vector<8x32xf32>
    %89 = vector.broadcast %87 : vector<8x1xf32> to vector<8x32xf32>
    %90 = arith.mulf %89, %88 : vector<8x32xf32>
    %91 = arith.addf %86, %90 : vector<8x32xf32>
    %92 = arith.mulf %53, %65 : vector<8x1xf32>
    %c0_31 = arith.constant 0 : index
    %c160_32 = arith.constant 160 : index
    %93 = vector.load %arg1[%c0_31, %c160_32] : memref<8x256xf32, #tpu.memory_space<vmem>>, vector<8x32xf32>
    %94 = vector.broadcast %92 : vector<8x1xf32> to vector<8x32xf32>
    %95 = arith.mulf %94, %93 : vector<8x32xf32>
    %96 = arith.addf %91, %95 : vector<8x32xf32>
    %97 = arith.mulf %55, %65 : vector<8x1xf32>
    %c0_33 = arith.constant 0 : index
    %c192_34 = arith.constant 192 : index
    %98 = vector.load %arg1[%c0_33, %c192_34] : memref<8x256xf32, #tpu.memory_space<vmem>>, vector<8x32xf32>
    %99 = vector.broadcast %97 : vector<8x1xf32> to vector<8x32xf32>
    %100 = arith.mulf %99, %98 : vector<8x32xf32>
    %101 = arith.addf %96, %100 : vector<8x32xf32>
    %102 = arith.mulf %57, %65 : vector<8x1xf32>
    %c0_35 = arith.constant 0 : index
    %c224_36 = arith.constant 224 : index
    %103 = vector.load %arg1[%c0_35, %c224_36] : memref<8x256xf32, #tpu.memory_space<vmem>>, vector<8x32xf32>
    %104 = vector.broadcast %102 : vector<8x1xf32> to vector<8x32xf32>
    %105 = arith.mulf %104, %103 : vector<8x32xf32>
    %106 = arith.addf %101, %105 : vector<8x32xf32>
    %c0_37 = arith.constant 0 : index
    %c0_38 = arith.constant 0 : index
    %107 = vector.load %arg3[%c0_37, %c0_38] : memref<8x32xf32, #tpu.memory_space<vmem>>, vector<8x32xf32>
    tpu.vector_store %arg3[%c0_37, %c0_38], %106 {strides = array<i32>} : memref<8x32xf32, #tpu.memory_space<vmem>>, vector<8x32xf32>,
    return
  }
  func.func @transform_0(%arg0: i32) -> (i32, i32) {
    %c0_i32 = arith.constant 0 : i32
    %c0_i32_0 = arith.constant 0 : i32
    return %arg0, %c0_i32 : i32, i32
  }
  func.func @transform_1(%arg0: i32) -> (i32, i32) {
    %c0_i32 = arith.constant 0 : i32
    %c0_i32_0 = arith.constant 0 : i32
    %c0_i32_1 = arith.constant 0 : i32
    return %c0_i32, %c0_i32_0 : i32, i32
  }
  func.func @transform_2(%arg0: i32) -> (i32, i32) {
    %c0_i32 = arith.constant 0 : i32
    %c0_i32_0 = arith.constant 0 : i32
    return %arg0, %c0_i32 : i32, i32
  }
}

</mosaic_0001>

<bundles_post_ra>
// kernel: tpu_custom_call.1
= control target key start
LH: loop header
LB: loop body
LE: loop exit
PB: predicated region body
PF: predicated region fallthrough
CT: control target
= control target key end

     0   :  { %7 = vsyncpa [#allocation3], 0  ;;  %s550_s0 = inlined_call_operand.hbm [shape: f32[8,256], index: 0, kind: input, shape index: {}]   ;;  %s551_s1 = inlined_call_operand.hbm [shape: f32[32,32], index: 1, kind: input, shape index: {}]   ;;  %s552_s2 = inlined_call_operand.hbm [shape: f32[8,32], index: 2, kind: output, shape index: {}]  }
   0x1   :  { %8 = vsyncpa [#allocation6], 0 }
   0x2   :  { %9 = vsyncpa [#allocation4], 0  ;;  %s432_s9 = smov [#allocation2]   ;;  %s433_s11 = smov [#allocation5]  }
   0x3   :  { %s16_s10 = sshll.u32 %s432_s9, 4  ;;  %s25_s12 = sshll.u32 %s433_s11, 4  ;;  %s17_s10 = int_to_ptr.vmem [resolvable:$true] %s16_s10  ;;  %s458_s12 = int_to_ptr.vmem [resolvable:$true] %s25_s12 }
   0x4   :  { %s360_s15 = scalar_lea.hbm %s550_s0, 256 }
   0x5   :  { %p361_p0 = scmp.ne.s32.totalorder %s550_s0, %s360_s15  ;;  %p364_p1 = scmp.lt.u32.totalorder %s360_s15, %s550_s0 }
   0x7   :  { %p366_p2 = pnand %p364_p1, %p361_p0 }
   0x9   :  { %369 = shalt.err (!%p366_p2)
}
   0xa   :  { %s370_s20 = scalar_lea.vmem %s17_s10, 256  ;;  %p375_p4 = scmp.lt.s32.totalorder %s17_s10, %s17_s10 }
   0xb   :  { %p371_p3 = scmp.ne.s32.totalorder %s17_s10, %s370_s20  ;;  %p376_p5 = scmp.lt.s32.totalorder %s370_s20, %s370_s20 }
   0xd   :  { %p377_p6 = por %p376_p5, %p375_p4 }
   0xf   :  { %p378_p7 = pnand %p377_p6, %p371_p3 }
  0x11   :  { %381 = shalt.err (!%p378_p7)
}
  0x12   :  { %19 = dma.hbm_to_vmem [thread:$0]  %s550_s0, 256, %s17_s10, [#allocation3]  }
  0x13   :  { %s382_s25 = scalar_lea.hbm %s551_s1, 512 }
  0x14   :  { %p383_p8 = scmp.ne.s32.totalorder %s551_s1, %s382_s25  ;;  %p386_p9 = scmp.lt.u32.totalorder %s382_s25, %s551_s1 }
  0x16   :  { %p388_p10 = pnand %p386_p9, %p383_p8 }
  0x18   :  { %391 = shalt.err (!%p388_p10)
}
  0x19   :  { %s392_s30 = scalar_lea.vmem %s458_s12, 512  ;;  %p397_p12 = scmp.lt.s32.totalorder %s458_s12, %s458_s12 }
  0x1a   :  { %p393_p11 = scmp.ne.s32.totalorder %s458_s12, %s392_s30  ;;  %p398_p13 = scmp.lt.s32.totalorder %s392_s30, %s392_s30 }
  0x1c   :  { %p399_p0 = por %p398_p13, %p397_p12 }
  0x1e   :  { %p400_p1 = pnand %p399_p0, %p393_p11 }
  0x20   :  { %403 = shalt.err (!%p400_p1)
}
  0x21   :  { %s434_s0 = smov 128   ;;  %s435_s3 = smov 8  }
  0x22   :  { %31 = dma.hbm_to_vmem [thread:$0]  %s551_s1, 512, %s458_s12, [#allocation6], %s434_s0, %s434_s0, %s435_s3  }
  0x23   :  { %426 = dma.done.wait [#allocation3], 256  }
  0x24   :  { %427 = vsyncadd [#allocation3], 4294967040 }
  0x25   :  { %428 = dma.done.wait [#allocation6], 512  }
  0x26   :  { %429 = vsyncadd [#allocation6], 4294966784  ;;  %v436_v0 = vmov 0.0|0.0   ;;  %vm437_vm0 = vmmov 0   ;;  %v438_v1 = vmov 0.0   ;;  %vm46_vm1 = vcmask 261120  }
  0x27   :  { %323 = vmatprep.subr.bf16.mxu0 %v436_v0  ;;  %320 = vmatprep.mubr.msk.f32.mxu0 %vm437_vm0, %v438_v1  ;;  %vm325_vm2 = vmpackc.low %vm46_vm1, %vm46_vm1  ;;  %v491_v2 = vld [vmem:[#allocation2 + $0x8] sm:$0xff]  ;;  %v38_v3 = vld [vmem:[#allocation5] sm:$0xff]  ;;  %s439_s6 = smov 32   ;;  %s440_s1 = smov 64  }
  0x28   :  { %v39_v4 = vld [vmem:[#allocation5 + $0x8] sm:$0xff]  ;;  %44 = vrot.lane.b32.xlu0 %v491_v2, %s439_s6  ;;  %v40_v6 = vld [vmem:[#allocation5 + $0x10] sm:$0xff]  ;;  %v41_v7 = vld [vmem:[#allocation5 + $0x18] sm:$0xff]  ;;  %s441_s7 = smov 96   ;;  %s442_s8 = smov [#allocation7]  }
  0x29   :  { %v324_v5 = vpack.c.bf16 %v39_v4, %v38_v3  ;;  %v328_v8 = vpack.c.bf16 %v41_v7, %v40_v6  ;;  %v499_v12 = vld [vmem:[#allocation2] sm:$0xff]  ;;  %s292_s9 = sshll.u32 %s442_s8, 4  ;;  %s293_s9 = int_to_ptr.vmem [resolvable:$true] %s292_s9 }
  0x2a   :  { %s404_s10 = scalar_lea.vmem %s293_s9, 128  ;;  %p409_p3 = scmp.lt.s32.totalorder %s293_s9, %s293_s9 }
  0x2b   :  { %326 = vmatpush3.bf16.xpose.msk.msra.mxu0 %vm325_vm2, %v324_v5  ;;  %p405_p2 = scmp.ne.s32.totalorder %s293_s9, %s404_s10  ;;  %p410_p4 = scmp.lt.s32.totalorder %s404_s10, %s404_s10 }
  0x2c   :  { %327 = vmatprep.subr.bf16.mxu0 %v436_v0 }
  0x2d   :  { %p411_p5 = por %p410_p4, %p409_p3 }
  0x2f   :  { %p412_p6 = pnand %p411_p5, %p405_p2 }
  0x33   :  { %330 = vmatpush3.bf16.xpose.msk.msra.mxu0 %vm325_vm2, %v328_v8 }
  0x9a   :  { %v45_v9 = vpop.permute.xlu0 %44 }
  0x9b   :  { %321 = vmatmul.mubr.msk.f32.vlgmr.msra.gmra.mrb[0].mxu0 %vm46_vm1, %v45_v9 }
 0x16e   :  { %v127_v10 = vpop.f32.mrb[0].mxu0 }
 0x16f   :  { %148 = vrot.lane.b32.xlu1 %v127_v10, %s440_s1  ;;  %137 = vrot.lane.b32.xlu0 %v127_v10, %s439_s6  ;;  %v322_v11 = vpop.f32.mrb[1].mxu0  ;;  %v132_v22 = vmul.f32 %v499_v12, %v127_v10  ;;  %v170_v28 = vmul.f32 %v127_v10, %v491_v2 }
 0x171   :  { %v133_v23 = vsel %vm46_vm1, %v132_v22, 0.0  ;;  %v171_v31 = vsel %vm46_vm1, %v170_v28, 0.0 }
 0x173   :  { %159 = vrot.lane.b32.xlu1 %v127_v10, %s441_s7 }
 0x1e1   :  { %v149_v13 = vpop.permute.xlu1 %148  ;;  %v138_v14 = vpop.permute.xlu0 %137 }
 0x1e2   :  { %v151_v15 = vmul.f32 %v149_v13, %v499_v12  ;;  %v140_v16 = vmul.f32 %v138_v14, %v499_v12  ;;  %v174_v18 = vmul.f32 %v138_v14, %v491_v2  ;;  %v182_v20 = vmul.f32 %v149_v13, %v491_v2 }
 0x1e4   :  { %153 = vrot.lane.b32.xlu1 %v151_v15, %s440_s1  ;;  %142 = vrot.lane.b32.xlu0 %v140_v16, %s441_s7 }
 0x1e5   :  { %v160_v17 = vpop.permute.xlu1 %159 }
 0x1e6   :  { %v162_v19 = vmul.f32 %v160_v17, %v499_v12  ;;  %v190_v21 = vmul.f32 %v160_v17, %v491_v2 }
 0x1e8   :  { %176 = vrot.lane.b32.xlu1 %v174_v18, %s441_s7  ;;  %164 = vrot.lane.b32.xlu0 %v162_v19, %s439_s6 }
 0x1ec   :  { %192 = vrot.lane.b32.xlu1 %v190_v21, %s439_s6  ;;  %184 = vrot.lane.b32.xlu0 %v182_v20, %s440_s1 }
 0x20b   :  { %134 = vadd.xlane.f32.xlu0 %v133_v23 }
 0x256   :  { %v154_v24 = vpop.permute.xlu1 %153  ;;  %v143_v25 = vpop.permute.xlu0 %142 }
 0x257   :  { %v145_v26 = vsel %vm46_vm1, %v143_v25, 0.0  ;;  %v156_v27 = vsel %vm46_vm1, %v154_v24, 0.0 }
 0x258   :  { %146 = vadd.xlane.f32.xlu1 %v145_v26  ;;  %157 = vadd.xlane.f32.xlu0 %v156_v27 }
 0x25a   :  { %v177_v29 = vpop.permute.xlu1 %176  ;;  %v165_v30 = vpop.permute.xlu0 %164 }
 0x25b   :  { %v167_v32 = vsel %vm46_vm1, %v165_v30, 0.0  ;;  %v179_v35 = vsel %vm46_vm1, %v177_v29, 0.0 }
 0x25c   :  { %172 = vadd.xlane.f32.xlu1 %v171_v31  ;;  %168 = vadd.xlane.f32.xlu0 %v167_v32 }
 0x25e   :  { %v185_v33 = vpop.permute.xlu0 %184  ;;  %v193_v36 = vpop.permute.xlu1 %192 }
 0x25f   :  { %v187_v34 = vsel %vm46_vm1, %v185_v33, 0.0  ;;  %v195_v37 = vsel %vm46_vm1, %v193_v36, 0.0 }
 0x260   :  { %188 = vadd.xlane.f32.xlu1 %v187_v34  ;;  %180 = vadd.xlane.f32.xlu0 %v179_v35 }
 0x264   :  { %196 = vadd.xlane.f32.xlu0 %v195_v37 }
 0x298   :  { %v135_v38 = vpop.xlane.xlu0 %134 }
 0x2e5   :  { %v147_v39 = vpop.xlane.xlu1 %146  ;;  %v158_v40 = vpop.xlane.xlu0 %157 }
 0x2e6   :  { %v198_v41 = vmax.f32 %v135_v38, %v147_v39 }
 0x2e8   :  { %v199_v42 = vmax.f32 %v198_v41, %v158_v40 }
 0x2e9   :  { %v173_v43 = vpop.xlane.xlu1 %172  ;;  %v169_v44 = vpop.xlane.xlu0 %168 }
 0x2ea   :  { %v200_v45 = vmax.f32 %v199_v42, %v169_v44 }
 0x2ec   :  { %v201_v46 = vmax.f32 %v200_v45, %v173_v43 }
 0x2ed   :  { %v181_v47 = vpop.xlane.xlu0 %180  ;;  %v189_v49 = vpop.xlane.xlu1 %188 }
 0x2ee   :  { %v202_v48 = vmax.f32 %v201_v46, %v181_v47 }
 0x2f0   :  { %v203_v50 = vmax.f32 %v202_v48, %v189_v49 }
 0x2f1   :  { %v197_v51 = vpop.xlane.xlu0 %196 }
 0x2f2   :  { %v204_v52 = vmax.f32 %v203_v50, %v197_v51 }
 0x2f4   :  { %v205_v53 = vsub.f32 %v135_v38, %v204_v52  ;;  %v208_v54 = vsub.f32 %v147_v39, %v204_v52  ;;  %v211_v55 = vsub.f32 %v158_v40, %v204_v52  ;;  %v214_v56 = vsub.f32 %v169_v44, %v204_v52 }
 0x2f5   :  { %v217_v60 = vsub.f32 %v173_v43, %v204_v52  ;;  %v220_v62 = vsub.f32 %v181_v47, %v204_v52  ;;  %v223_v0 = vsub.f32 %v189_v49, %v204_v52  ;;  %v226_v3 = vsub.f32 %v197_v51, %v204_v52 }
 0x2f6   :  { %v206_v57 = vmul.f32 1.442695, %v205_v53  ;;  %v209_v58 = vmul.f32 1.442695, %v208_v54  ;;  %v212_v59 = vmul.f32 1.442695, %v211_v55 }
 0x2f7   :  { %v215_v61 = vmul.f32 1.442695, %v214_v56  ;;  %v218_v63 = vmul.f32 1.442695, %v217_v60  ;;  %v221_v1 = vmul.f32 1.442695, %v220_v62 }
 0x2f8   :  { %342 = vpow2.f32 %v206_v57  ;;  %v224_v4 = vmul.f32 1.442695, %v223_v0  ;;  %v227_v5 = vmul.f32 1.442695, %v226_v3 }
 0x2f9   :  { %344 = vpow2.f32 %v209_v58 }
 0x2fa   :  { %346 = vpow2.f32 %v212_v59 }
 0x2fb   :  { %348 = vpow2.f32 %v215_v61 }
 0x2fc   :  { %350 = vpow2.f32 %v218_v63 }
 0x2fd   :  { %352 = vpow2.f32 %v221_v1 }
 0x2fe   :  { %354 = vpow2.f32 %v224_v4 }
 0x2ff   :  { %356 = vpow2.f32 %v227_v5 }
 0x302   :  { %v343_v6 = vpop.eup %342 }
 0x303   :  { %v345_v7 = vpop.eup %344 }
 0x304   :  { %v229_v8 = vadd.f32 %v345_v7, %v343_v6  ;;  %v347_v9 = vpop.eup %346 }
 0x305   :  { %v349_v11 = vpop.eup %348 }
 0x306   :  { %v230_v10 = vadd.f32 %v347_v9, %v229_v8  ;;  %v351_v14 = vpop.eup %350 }
 0x307   :  { %v353_v16 = vpop.eup %352 }
 0x308   :  { %v231_v13 = vadd.f32 %v349_v11, %v230_v10  ;;  %v355_v18 = vpop.eup %354 }
 0x309   :  { %v357_v20 = vpop.eup %356 }
 0x30a   :  { %v232_v15 = vadd.f32 %v351_v14, %v231_v13 }
 0x30c   :  { %v233_v17 = vadd.f32 %v353_v16, %v232_v15 }
 0x30e   :  { %v234_v19 = vadd.f32 %v355_v18, %v233_v17 }
 0x310   :  { %v235_v21 = vadd.f32 %v357_v20, %v234_v19 }
 0x312   :  { %358 = vrcp.f32 %v235_v21 }
 0x31c   :  { %v359_v22 = vpop.eup %358 }
 0x31d   :  { %v247_v23 = vmul.f32 %v359_v22, %v347_v9  ;;  %v240_v24 = vmul.f32 %v359_v22, %v345_v7  ;;  %v237_v25 = vmul.f32 %v359_v22, %v343_v6  ;;  %v261_v26 = vmul.f32 %v359_v22, %v351_v14 }
 0x31e   :  { %v271_v29 = vmul.f32 %v359_v22, %v355_v18  ;;  %v254_v30 = vmul.f32 %v359_v22, %v349_v11  ;;  %v264_v33 = vmul.f32 %v359_v22, %v353_v16  ;;  %v278_v35 = vmul.f32 %v359_v22, %v357_v20 }
 0x31f   :  { %v248_v27 = vmul.f32 %v247_v23, %v499_v12  ;;  %v241_v28 = vmul.f32 %v240_v24, %v499_v12  ;;  %v238_v37 = vmul.f32 %v237_v25, %v499_v12  ;;  %v262_v44 = vmul.f32 %v261_v26, %v491_v2 }
 0x320   :  { %v272_v31 = vmul.f32 %v271_v29, %v491_v2  ;;  %v255_v32 = vmul.f32 %v254_v30, %v499_v12  ;;  %v265_v34 = vmul.f32 %v264_v33, %v491_v2  ;;  %v279_v36 = vmul.f32 %v278_v35, %v491_v2 }
 0x321   :  { %250 = vrot.lane.b32.xlu0 %v248_v27, %s440_s1  ;;  %243 = vrot.lane.b32.xlu1 %v241_v28, %s441_s7 }
 0x325   :  { %274 = vrot.lane.b32.xlu0 %v272_v31, %s440_s1  ;;  %257 = vrot.lane.b32.xlu1 %v255_v32, %s439_s6 }
 0x329   :  { %267 = vrot.lane.b32.xlu1 %v265_v34, %s441_s7 }
 0x32d   :  { %281 = vrot.lane.b32.xlu1 %v279_v36, %s439_s6 }
 0x393   :  { %v244_v38 = vpop.permute.xlu1 %243  ;;  %v251_v40 = vpop.permute.xlu0 %250 }
 0x394   :  { %v246_v39 = vadd.f32 %v244_v38, %v238_v37 }
 0x396   :  { %v253_v41 = vadd.f32 %v251_v40, %v246_v39 }
 0x397   :  { %v258_v42 = vpop.permute.xlu1 %257  ;;  %v275_v48 = vpop.permute.xlu0 %274 }
 0x398   :  { %v260_v43 = vadd.f32 %v258_v42, %v253_v41 }
 0x39a   :  { %v263_v45 = vadd.f32 %v262_v44, %v260_v43 }
 0x39b   :  { %v268_v46 = vpop.permute.xlu1 %267 }
 0x39c   :  { %v270_v47 = vadd.f32 %v268_v46, %v263_v45 }
 0x39e   :  { %v277_v49 = vadd.f32 %v275_v48, %v270_v47 }
 0x39f   :  { %v282_v50 = vpop.permute.xlu1 %281 }
 0x3a0   :  { %v284_v51 = vadd.f32 %v282_v50, %v277_v49 }
 0x3a2   :  { %285 = vst.msk [vmem:[#allocation7] sm:$0xff] %vm46_vm1, %v284_v51 }
 0x3a3   :  { %415 = shalt.err (!%p412_p6)
}
 0x3a4   :  { %s416_s13 = scalar_lea.hbm %s552_s2, 128 }
 0x3a5   :  { %p417_p7 = scmp.ne.s32.totalorder %s552_s2, %s416_s13  ;;  %p420_p8 = scmp.lt.u32.totalorder %s416_s13, %s552_s2 }
 0x3a7   :  { %p422_p9 = pnand %p420_p8, %p417_p7 }
 0x3a9   :  { %425 = shalt.err (!%p422_p9)
}
 0x3aa   :  { %295 = dma.vmem_to_hbm [thread:$0]  %s293_s9, 128, %s552_s2, [#allocation4]  }
 0x3ab   :  { %430 = dma.done.wait [#allocation4], 128  }
 0x3ac   :  { %431 = vsyncadd [#allocation4], 4294967168 }
 0x3ad   :  { %299 = vsyncpa [#allocation3], 1 }
 0x3ae   :  { %300 = vsyncpa [#allocation6], 1 }
 0x3af   :  { %301 = vsyncpa [#allocation4], 1 }

</bundles_post_ra>
